<compile_context>
chip_gen: v6e
topology: v6e:2x2x1
jax: 0.10.0
libtpu: 0.0.40
codegen_flags: <defaults>
</compile_context>

<pallas_src>
import jax
import jax.numpy as jnp
from jax.experimental import pallas as pl
from jax.experimental.pallas import tpu as pltpu

NEG_SLOPE = 0.01  # torch.nn.LeakyReLU default


def _linear_block_kernel(x_ref, w_ref, o_ref, acc_ref):
    # x_ref: (tm, tk), w_ref: (tk, tn)  [weight already (D_in, D_out) layout],
    # o_ref: (tm, tn), acc_ref: (tm, tn) f32 accumulator.
    k = pl.program_id(2)

    @pl.when(k == 0)
    def _():
        acc_ref[...] = jnp.zeros_like(acc_ref)

    acc_ref[...] += jnp.dot(
        x_ref[...], w_ref[...], preferred_element_type=jnp.float32
    )

    @pl.when(k == pl.num_programs(2) - 1)
    def _():
        y = acc_ref[...]
        # leaky_relu with 0 < slope < 1  ==  max(y, slope * y)
        y = jnp.maximum(y, NEG_SLOPE * y)
        o_ref[...] = y.astype(o_ref.dtype)


def _round_up(v, m):
    return ((v + m - 1) // m) * m


def linear_block(x, weight, *, tm=None, tn=None, tk=None, compute_dtype=None):
    """x: (B, D_in); weight: (D_out, D_in) PyTorch layout -> (B, D_out).

    compute_dtype: optionally cast operands (e.g. jnp.bfloat16 for v6e/v7x
    production sizes); accumulation stays f32 either way.
    """
    B, D_in = x.shape
    D_out, D_in_w = weight.shape
    assert D_in == D_in_w
    out_dtype = x.dtype

    # One-time layout change outside the kernel: (D_out, D_in) -> (D_in, D_out).
    w = weight.T

    if compute_dtype is not None:
        x = x.astype(compute_dtype)
        w = w.astype(compute_dtype)

    # Tile sizes: (8,128)-aligned, capped so double-buffered f32 tiles stay
    # small (~4.5 MiB total), safe on v7x's 64 MiB VMEM.
    if tm is None:
        tm = min(256, _round_up(B, 8))
    if tn is None:
        tn = min(512, _round_up(D_out, 128))
    if tk is None:
        tk = min(512, _round_up(D_in, 128))

    M_pad = _round_up(B, tm)
    N_pad = _round_up(D_out, tn)     # lane-dense output (multiple of 128)
    K_pad = _round_up(D_in, tk)

    if (M_pad, K_pad) != (B, D_in):
        x = jnp.pad(x, ((0, M_pad - B), (0, K_pad - D_in)))
    if (K_pad, N_pad) != (D_in, D_out):
        w = jnp.pad(w, ((0, K_pad - D_in), (0, N_pad - D_out)))

    grid = (M_pad // tm, N_pad // tn, K_pad // tk)

    out = pl.pallas_call(
        _linear_block_kernel,
        out_shape=jax.ShapeDtypeStruct((M_pad, N_pad), out_dtype),
        grid_spec=pltpu.PrefetchScalarGridSpec(
            num_scalar_prefetch=0,
            grid=grid,
            in_specs=[
                # x block depends on (batch tile i, K tile k) only.
                pl.BlockSpec((tm, tk), lambda i, j, k: (i, k)),
                # W block independent of batch axis i -> revisited, not
                # re-streamed per batch tile.
                pl.BlockSpec((tk, tn), lambda i, j, k: (k, j)),
            ],
            out_specs=pl.BlockSpec((tm, tn), lambda i, j, k: (i, j)),
            scratch_shapes=[pltpu.VMEM((tm, tn), jnp.float32)],
        ),
        compiler_params=pltpu.CompilerParams(
            dimension_semantics=("parallel", "parallel", "arbitrary"),
            vmem_limit_bytes=32 * 1024 * 1024,
        ),
    )(x, w)

    return out[:B, :D_out]


def _reference(x, weight):
    y = x @ weight.T
    return jnp.where(y > 0, y, NEG_SLOPE * y)


if __name__ == "__main__":
    key = jax.random.PRNGKey(0)
    k_x, k_w = jax.random.split(key)

    batch, input_dim, output_dim = 8, 32, 64

    x = jax.random.normal(k_x, (batch, input_dim), dtype=jnp.float32)
    # Deterministic param init (Kaiming-uniform-ish bound like nn.Linear).
    bound = 1.0 / (input_dim ** 0.5)
    weight = jax.random.uniform(
        k_w, (output_dim, input_dim), dtype=jnp.float32, minval=-bound, maxval=bound
    )

    out = linear_block(x, weight)
    out = jax.block_until_ready(out)

    ref = _reference(x, weight)
    assert out.shape == (batch, output_dim)
    assert jnp.allclose(out, ref, atol=1e-5, rtol=1e-5)

    print("KERNEL_OK")
</pallas_src>

<mosaic_0001>
module attributes {stable_mosaic.version = 11 : i64} {
  func.func @_linear_block_kernel(%arg0: i32, %arg1: i32, %arg2: i32, %arg3: memref<8x128xf32, #tpu.memory_space<vmem>>, %arg4: memref<128x128xf32, #tpu.memory_space<vmem>>, %arg5: memref<8x128xf32, #tpu.memory_space<vmem>>, %arg6: memref<8x128xf32, #tpu.memory_space<vmem>>) attributes {dimension_semantics = [#tpu.dimension_semantics<parallel>, #tpu.dimension_semantics<parallel>, #tpu.dimension_semantics<arbitrary>], iteration_bounds = array<i64: 1, 1, 1>, scalar_prefetch = 0 : i64, scratch_operands = 1 : i64, tpu.core_type = #tpu.core_type<tc>, window_params = [{transform_indices = @transform_0, window_bounds = array<i64: 8, 128>}, {transform_indices = @transform_1, window_bounds = array<i64: 128, 128>}, {transform_indices = @transform_2, window_bounds = array<i64: 8, 128>}]} {
    %c0_i32 = arith.constant 0 : i32
    %0 = arith.cmpi eq, %arg2, %c0_i32 : i32
    %1 = arith.extui %0 : i1 to i32
    %c0_i32_0 = arith.constant 0 : i32
    %2 = arith.cmpi ne, %1, %c0_i32_0 : i32
    scf.if %2 {
      %cst_10 = arith.constant 0.000000e+00 : f32
      %12 = vector.broadcast %cst_10 : f32 to vector<8x128xf32>
      %c0_11 = arith.constant 0 : index
      %c0_12 = arith.constant 0 : index
      %13 = vector.load %arg6[%c0_11, %c0_12] : memref<8x128xf32, #tpu.memory_space<vmem>>, vector<8x128xf32>
      tpu.vector_store %arg6[%c0_11, %c0_12], %12 {strides = array<i32>} : memref<8x128xf32, #tpu.memory_space<vmem>>, vector<8x128xf32>,
    } else {
    }
    %c0 = arith.constant 0 : index
    %c0_1 = arith.constant 0 : index
    %3 = vector.load %arg6[%c0, %c0_1] : memref<8x128xf32, #tpu.memory_space<vmem>>, vector<8x128xf32>
    %c0_2 = arith.constant 0 : index
    %c0_3 = arith.constant 0 : index
    %4 = vector.load %arg3[%c0_2, %c0_3] : memref<8x128xf32, #tpu.memory_space<vmem>>, vector<8x128xf32>
    %c0_4 = arith.constant 0 : index
    %c0_5 = arith.constant 0 : index
    %5 = vector.load %arg4[%c0_4, %c0_5] : memref<128x128xf32, #tpu.memory_space<vmem>>, vector<128x128xf32>
    %cst = arith.constant dense<0.000000e+00> : vector<8x128xf32>
    %6 = tpu.matmul %4, %5, %cst {dimension_numbers = #tpu.dot_dimension_numbers<[1], [0], [0], [1], [0, 0, 1, 1], [], []>} : vector<8x128xf32>, vector<128x128xf32>, vector<8x128xf32> -> vector<8x128xf32>
    %7 = arith.addf %3, %6 : vector<8x128xf32>
    %c0_6 = arith.constant 0 : index
    %c0_7 = arith.constant 0 : index
    %8 = vector.load %arg6[%c0_6, %c0_7] : memref<8x128xf32, #tpu.memory_space<vmem>>, vector<8x128xf32>
    tpu.vector_store %arg6[%c0_6, %c0_7], %7 {strides = array<i32>} : memref<8x128xf32, #tpu.memory_space<vmem>>, vector<8x128xf32>,
    %c0_i32_8 = arith.constant 0 : i32
    %9 = arith.cmpi eq, %arg2, %c0_i32_8 : i32
    %10 = arith.extui %9 : i1 to i32
    %c0_i32_9 = arith.constant 0 : i32
    %11 = arith.cmpi ne, %10, %c0_i32_9 : i32
    scf.if %11 {
      %c0_10 = arith.constant 0 : index
      %c0_11 = arith.constant 0 : index
      %12 = vector.load %arg6[%c0_10, %c0_11] : memref<8x128xf32, #tpu.memory_space<vmem>>, vector<8x128xf32>
      %cst_12 = arith.constant 0.00999999977 : f32
      %13 = vector.broadcast %cst_12 : f32 to vector<8x128xf32>
      %14 = arith.mulf %13, %12 : vector<8x128xf32>
      %15 = arith.maximumf %12, %14 : vector<8x128xf32>
      %c0_13 = arith.constant 0 : index
      %c0_14 = arith.constant 0 : index
      %16 = vector.load %arg5[%c0_13, %c0_14] : memref<8x128xf32, #tpu.memory_space<vmem>>, vector<8x128xf32>
      tpu.vector_store %arg5[%c0_13, %c0_14], %15 {strides = array<i32>} : memref<8x128xf32, #tpu.memory_space<vmem>>, vector<8x128xf32>,
    } else {
    }
    return
  }
  func.func @transform_0(%arg0: i32, %arg1: i32, %arg2: i32) -> (i32, i32) {
    %c0_i32 = arith.constant 0 : i32
    return %arg0, %arg2 : i32, i32
  }
  func.func @transform_1(%arg0: i32, %arg1: i32, %arg2: i32) -> (i32, i32) {
    %c0_i32 = arith.constant 0 : i32
    return %arg2, %arg1 : i32, i32
  }
  func.func @transform_2(%arg0: i32, %arg1: i32, %arg2: i32) -> (i32, i32) {
    %c0_i32 = arith.constant 0 : i32
    return %arg0, %arg1 : i32, i32
  }
}

</mosaic_0001>

<bundles_post_ra>
// kernel: tpu_custom_call.1
= control target key start
LH: loop header
LB: loop body
LE: loop exit
PB: predicated region body
PF: predicated region fallthrough
CT: control target
= control target key end

     0   :  { %7 = vsyncpa [#allocation4], 0  ;;  %s312_s0 = inlined_call_operand.hbm [shape: f32[8,128], index: 0, kind: input, shape index: {}]   ;;  %s313_s1 = inlined_call_operand.hbm [shape: f32[128,128], index: 1, kind: input, shape index: {}]   ;;  %s314_s2 = inlined_call_operand.hbm [shape: f32[8,128], index: 2, kind: output, shape index: {}]  }
   0x1   :  { %8 = vsyncpa [#allocation7], 0 }
   0x2   :  { %9 = vsyncpa [#allocation5], 0  ;;  %s281_s9 = smov [#allocation3]   ;;  %s282_s11 = smov [#allocation6]  }
   0x3   :  { %s16_s10 = sshll.u32 %s281_s9, 4  ;;  %s25_s12 = sshll.u32 %s282_s11, 4  ;;  %s17_s10 = int_to_ptr.vmem [resolvable:$true] %s16_s10  ;;  %s26_s12 = int_to_ptr.vmem [resolvable:$true] %s25_s12 }
   0x4   :  { %s223_s13 = scalar_lea.vmem %s17_s10, 128  ;;  %p228_p1 = scmp.lt.s32.totalorder %s17_s10, %s17_s10 }
   0x5   :  { %p224_p0 = scmp.ne.s32.totalorder %s17_s10, %s223_s13  ;;  %p229_p2 = scmp.lt.s32.totalorder %s223_s13, %s223_s13 }
   0x7   :  { %p230_p3 = por %p229_p2, %p228_p1 }
   0x9   :  { %p231_p4 = pnand %p230_p3, %p224_p0 }
   0xb   :  { %234 = shalt.err (!%p231_p4)
}
   0xc   :  { %19 = dma.hbm_to_vmem [thread:$0]  %s312_s0, 128, %s17_s10, [#allocation4]  }
   0xd   :  { %s243_s16 = scalar_lea.vmem %s26_s12, 2048  ;;  %p248_p6 = scmp.lt.s32.totalorder %s26_s12, %s26_s12 }
   0xe   :  { %p244_p5 = scmp.ne.s32.totalorder %s26_s12, %s243_s16  ;;  %p249_p7 = scmp.lt.s32.totalorder %s243_s16, %s243_s16 }
  0x10   :  { %p250_p8 = por %p249_p7, %p248_p6 }
  0x12   :  { %p251_p9 = pnand %p250_p8, %p244_p5 }
  0x14   :  { %254 = shalt.err (!%p251_p9)
}
  0x15   :  { %s283_s17 = smov 128   ;;  %s284_s18 = smov 8  }
  0x16   :  { %31 = dma.hbm_to_vmem [thread:$0]  %s313_s1, 2048, %s26_s12, [#allocation7], %s283_s17, %s283_s17, %s284_s18  }
  0x17   :  { %275 = dma.done.wait [#allocation4], 128  }
  0x18   :  { %276 = vsyncadd [#allocation4], 4294967168 }
  0x19   :  { %277 = dma.done.wait [#allocation7], 2048  }
  0x1a   :  { %278 = vsyncadd [#allocation7], 4294965248  ;;  %v285_v0 = vmov 0.0   ;;  %vm286_vm0 = vmmov 0   ;;  %v60_v1 = vld [vmem:[#allocation6 + $0x78] sm:$0xff]  ;;  %v59_v2 = vld [vmem:[#allocation6 + $0x70] sm:$0xff] }
  0x1b   :  { %173 = vmatprep.subr.mxu0 %v285_v0  ;;  %205 = vmatprep.mubr.msk.f32.mxu0 %vm286_vm0, %v285_v0  ;;  %v58_v3 = vld [vmem:[#allocation6 + $0x68] sm:$0xff]  ;;  %v57_v4 = vld [vmem:[#allocation6 + $0x60] sm:$0xff]  ;;  %v56_v5 = vld [vmem:[#allocation6 + $0x58] sm:$0xff]  ;;  %s287_s0 = smov [#allocation8]  }
  0x1c   :  { %174 = vmatpush3.msra.mxu0 %v60_v1  ;;  %v55_v6 = vld [vmem:[#allocation6 + $0x50] sm:$0xff]  ;;  %v54_v7 = vld [vmem:[#allocation6 + $0x48] sm:$0xff]  ;;  %v53_v8 = vld [vmem:[#allocation6 + $0x40] sm:$0xff]  ;;  %s146_s1 = sshll.u32 %s287_s0, 4  ;;  %s147_s1 = int_to_ptr.vmem [resolvable:$true] %s146_s1 }
  0x1d   :  { %175 = vmatprep.subr.mxu0 %v285_v0  ;;  %v52_v9 = vld [vmem:[#allocation6 + $0x38] sm:$0xff]  ;;  %v51_v10 = vld [vmem:[#allocation6 + $0x30] sm:$0xff]  ;;  %v50_v11 = vld [vmem:[#allocation6 + $0x28] sm:$0xff]  ;;  %s255_s21 = scalar_lea.vmem %s147_s1, 128  ;;  %p260_p11 = scmp.lt.s32.totalorder %s147_s1, %s147_s1 }
  0x1e   :  { %176 = vmatpush3.msra.mxu0 %v59_v2  ;;  %v49_v12 = vld [vmem:[#allocation6 + $0x20] sm:$0xff]  ;;  %v48_v13 = vld [vmem:[#allocation6 + $0x18] sm:$0xff]  ;;  %v47_v14 = vld [vmem:[#allocation6 + $0x10] sm:$0xff]  ;;  %p256_p10 = scmp.ne.s32.totalorder %s147_s1, %s255_s21  ;;  %p261_p12 = scmp.lt.s32.totalorder %s255_s21, %s255_s21 }
  0x1f   :  { %177 = vmatprep.subr.mxu0 %v285_v0  ;;  %v46_v15 = vld [vmem:[#allocation6 + $0x8] sm:$0xff]  ;;  %v45_v16 = vld [vmem:[#allocation6] sm:$0xff]  ;;  %v44_v17 = vld [vmem:[#allocation3] sm:$0xff] }
  0x20   :  { %178 = vmatpush3.msra.mxu0 %v58_v3  ;;  %p262_p13 = por %p261_p12, %p260_p11 }
  0x21   :  { %179 = vmatprep.subr.mxu0 %v285_v0 }
  0x22   :  { %180 = vmatpush3.msra.mxu0 %v57_v4  ;;  %p263_p0 = pnand %p262_p13, %p256_p10 }
  0x23   :  { %181 = vmatprep.subr.mxu0 %v285_v0 }
  0x24   :  { %182 = vmatpush3.msra.mxu0 %v56_v5 }
  0x25   :  { %183 = vmatprep.subr.mxu0 %v285_v0 }
  0x26   :  { %184 = vmatpush3.msra.mxu0 %v55_v6 }
  0x27   :  { %185 = vmatprep.subr.mxu0 %v285_v0 }
  0x28   :  { %186 = vmatpush3.msra.mxu0 %v54_v7 }
  0x29   :  { %187 = vmatprep.subr.mxu0 %v285_v0 }
  0x2a   :  { %188 = vmatpush3.msra.mxu0 %v53_v8 }
  0x2b   :  { %189 = vmatprep.subr.mxu0 %v285_v0 }
  0x2c   :  { %190 = vmatpush3.msra.mxu0 %v52_v9 }
  0x2d   :  { %191 = vmatprep.subr.mxu0 %v285_v0 }
  0x2e   :  { %192 = vmatpush3.msra.mxu0 %v51_v10 }
  0x2f   :  { %193 = vmatprep.subr.mxu0 %v285_v0 }
  0x30   :  { %194 = vmatpush3.msra.mxu0 %v50_v11 }
  0x31   :  { %195 = vmatprep.subr.mxu0 %v285_v0 }
  0x32   :  { %196 = vmatpush3.msra.mxu0 %v49_v12 }
  0x33   :  { %197 = vmatprep.subr.mxu0 %v285_v0 }
  0x34   :  { %198 = vmatpush3.msra.mxu0 %v48_v13 }
  0x35   :  { %199 = vmatprep.subr.mxu0 %v285_v0 }
  0x36   :  { %200 = vmatpush3.msra.mxu0 %v47_v14 }
  0x37   :  { %201 = vmatprep.subr.mxu0 %v285_v0 }
  0x38   :  { %202 = vmatpush3.msra.mxu0 %v46_v15 }
  0x39   :  { %203 = vmatprep.subr.mxu0 %v285_v0 }
  0x3a   :  { %204 = vmatpush3.msra.mxu0 %v45_v16 }
  0x3b   :  { %206 = vmatmul.mubr.f32.vlgmr.msra.gmra.mxu0 %v44_v17 }
  0xfb   :  { %v127_v18 = vpop.f32.mrf.mxu0 }
  0xfc   :  { %v137_v19 = vmul.f32 0.01, %v127_v18 }
  0xfd   :  { %v207_v20 = vpop.f32.mrf.mxu0 }
  0xfe   :  { %v138_v21 = vmax.f32 %v127_v18, %v137_v19 }
 0x100   :  { %139 = vst [vmem:[#allocation8] sm:$0xff] %v138_v21 }
 0x101   :  { %266 = shalt.err (!%p263_p0)
}
 0x102   :  { %149 = dma.vmem_to_hbm [thread:$0]  %s147_s1, 128, %s314_s2, [#allocation5]  }
 0x103   :  { %279 = dma.done.wait [#allocation5], 128  }
 0x104   :  { %280 = vsyncadd [#allocation5], 4294967168 }
 0x105   :  { %153 = vsyncpa [#allocation4], 1 }
 0x106   :  { %154 = vsyncpa [#allocation7], 1 }
 0x107   :  { %155 = vsyncpa [#allocation5], 1 }

</bundles_post_ra>
